<compile_context>
chip_gen: v7x
topology: tpu7x:2x2x1
jax: 0.10.0
libtpu: 0.0.40
codegen_flags: <defaults>
</compile_context>

<pallas_src>
import math
from functools import partial

import jax
import jax.numpy as jnp
import numpy as np
from jax.experimental import pallas as pl
from jax.experimental.pallas import tpu as pltpu


# ----------------------------- in-kernel helpers ------------------------------

def _layernorm(x, w, b, eps=1e-5):
    mu = jnp.mean(x, axis=-1, keepdims=True)
    xc = x - mu
    var = jnp.mean(xc * xc, axis=-1, keepdims=True)
    return xc * jax.lax.rsqrt(var + eps) * w + b


# --------------------------------- kernels ------------------------------------

def _embed_kernel(tok_ref, wconv_ref, poscls_ref, lnw_ref, lnb_ref, out_ref):
    # tok_ref: (1, N, C*p*p) with row 0 zeroed (class-token slot).
    t = jnp.dot(tok_ref[0].astype(jnp.bfloat16), wconv_ref[...],
                preferred_element_type=jnp.float32)
    t = t + poscls_ref[...]                                     # pos embed (+ cls in row 0)
    out_ref[0] = _layernorm(t, lnw_ref[...], lnb_ref[...])      # ln_pre


def _resblock_kernel(x_ref,
                     ln1w_ref, ln1b_ref,
                     wqkv_ref, bqkv_ref,
                     wo_ref, bo_ref,
                     ln2w_ref, ln2b_ref,
                     wfc_ref, bfc_ref,
                     wpj_ref, bpj_ref,
                     out_ref,
                     *, n_head):
    f32, bf16 = jnp.float32, jnp.bfloat16

    # First layer: load the residual stream into the VMEM-resident output block.
    @pl.when(pl.program_id(1) == 0)
    def _():
        out_ref[...] = x_ref[...]

    x = out_ref[0]                                  # (N, D) f32 residual, resident across l
    N, D = x.shape
    hd = D // n_head

    # ---- ln_1 + fused QKV projection: one (N, D) @ (D, 3D) MXU pass ----
    h = _layernorm(x, ln1w_ref[0], ln1b_ref[0])
    qkv = jnp.dot(h.astype(bf16), wqkv_ref[0],
                  preferred_element_type=f32) + bqkv_ref[0]          # (N, 3D)

    def heads(t):                                    # (N, D) -> (H, N, hd)
        return t.reshape(N, n_head, hd).transpose(1, 0, 2)

    q = heads(qkv[:, :D])        # 1/sqrt(hd) folded into wqkv/bqkv at wrapper time
    k = heads(qkv[:, D:2 * D])
    v = heads(qkv[:, 2 * D:])

    # ---- attention: bf16 matmuls, f32 softmax statistics, deferred normalization ----
    s = jnp.einsum('hqe,hke->hqk', q.astype(bf16), k.astype(bf16),
                   preferred_element_type=f32)                       # (H, N, N)
    s = s - jnp.max(s, axis=-1, keepdims=True)
    p = jnp.exp(s)
    lsum = jnp.sum(p, axis=-1, keepdims=True)                        # (H, N, 1)
    o = jnp.einsum('hqk,hkd->hqd', p.astype(bf16), v.astype(bf16),
                   preferred_element_type=f32)                       # (H, N, hd)
    o = o * pl.reciprocal(lsum, approx=True)     # normalize the small tensor, not p

    # ---- out-projection: single (N, D) @ (D, D) contraction over heads+dims ----
    o_flat = o.transpose(1, 0, 2).reshape(N, D)
    attn_out = jnp.dot(o_flat.astype(bf16), wo_ref[0],
                       preferred_element_type=f32) + bo_ref[0]
    x1 = x + attn_out                                                # ls_1 = Identity

    # ---- ln_2 + MLP (c_fc -> GELU -> c_proj) + residual (ls_2 = Identity) ----
    h2 = _layernorm(x1, ln2w_ref[0], ln2b_ref[0])
    fc = jnp.dot(h2.astype(bf16), wfc_ref[0],
                 preferred_element_type=f32) + bfc_ref[0]
    g = jax.nn.gelu(fc, approximate=True)                            # tanh GELU (EUP)
    pj = jnp.dot(g.astype(bf16), wpj_ref[0],
                 preferred_element_type=f32) + bpj_ref[0]

    out_ref[0] = x1 + pj


def _head_kernel(xcls_ref, lnw_ref, lnb_ref, proj_ref, out_ref):
    h = _layernorm(xcls_ref[...], lnw_ref[...], lnb_ref[...])        # ln_post
    out_ref[...] = jnp.dot(h.astype(jnp.bfloat16), proj_ref[...],
                           preferred_element_type=jnp.float32)       # @ proj


# --------------------------------- wrappers ------------------------------------

def _full_spec(shape):
    # Whole-array block, constant index map.
    return pl.BlockSpec(shape, lambda *_: (0,) * len(shape))


def _const_spec(shape):
    # Grid-invariant weight block: never changes -> single buffer (no wasted VMEM copy).
    return pl.BlockSpec(shape, lambda *_: (0,) * len(shape),
                        pipeline_mode=pl.Buffered(1))


def _extract_patches(x, patch):
    # x: (B, C, H, W) -> (B, P, C*patch*patch); (c, i, j) flattening matches
    # torch conv1.weight.reshape(width, -1).
    B, C, H, W = x.shape
    gh, gw = H // patch, W // patch
    x = x.reshape(B, C, gh, patch, gw, patch)
    x = x.transpose(0, 2, 4, 1, 3, 5)
    return x.reshape(B, gh * gw, C * patch * patch)


def _embed_call(tok_in, kp):
    B, N, Cpp = tok_in.shape
    D = kp["pos_cls"].shape[1]
    return pl.pallas_call(
        _embed_kernel,
        out_shape=jax.ShapeDtypeStruct((B, N, D), jnp.float32),
        grid=(B,),
        in_specs=[
            pl.BlockSpec((1, N, Cpp), lambda b: (b, 0, 0)),
            _const_spec((Cpp, D)),
            _const_spec((N, D)),
            _const_spec((1, D)),
            _const_spec((1, D)),
        ],
        out_specs=pl.BlockSpec((1, N, D), lambda b: (b, 0, 0)),
        compiler_params=pltpu.CompilerParams(dimension_semantics=("parallel",)),
    )(tok_in, kp["conv_w"], kp["pos_cls"], kp["ln_pre_w"], kp["ln_pre_b"])


def _resblock_call(x, kp, n_head):
    """All transformer layers in one pallas_call: grid = (batch, layer)."""
    B, N, D = x.shape
    L = kp["wqkv"].shape[0]

    def wspec(arr):
        # Per-layer weight slab: block (1, ...), indexed by the layer grid axis.
        # Default double buffering == prefetch of layer l+1 weights during layer l.
        shape = arr.shape
        nrest = len(shape) - 1
        return pl.BlockSpec((1,) + shape[1:],
                            lambda b, l, _n=nrest: (l,) + (0,) * _n)

    x_spec = pl.BlockSpec((1, N, D), lambda b, l: (b, 0, 0))

    return pl.pallas_call(
        partial(_resblock_kernel, n_head=n_head),
        out_shape=jax.ShapeDtypeStruct((B, N, D), jnp.float32),
        grid=(B, L),
        in_specs=[
            x_spec,
            wspec(kp["ln1_w"]), wspec(kp["ln1_b"]),
            wspec(kp["wqkv"]), wspec(kp["bqkv"]),
            wspec(kp["wo"]), wspec(kp["bo"]),
            wspec(kp["ln2_w"]), wspec(kp["ln2_b"]),
            wspec(kp["wfc"]), wspec(kp["bfc"]),
            wspec(kp["wpj"]), wspec(kp["bpj"]),
        ],
        # constant over the layer axis -> residual stays resident in VMEM across layers
        out_specs=pl.BlockSpec((1, N, D), lambda b, l: (b, 0, 0)),
        compiler_params=pltpu.CompilerParams(
            dimension_semantics=("parallel", "arbitrary"),
            vmem_limit_bytes=64 * 1024 * 1024),
    )(x, kp["ln1_w"], kp["ln1_b"], kp["wqkv"], kp["bqkv"],
      kp["wo"], kp["bo"], kp["ln2_w"], kp["ln2_b"],
      kp["wfc"], kp["bfc"], kp["wpj"], kp["bpj"])


def _head_call(x_cls, kp):
    B, D = x_cls.shape
    out_dim = kp["proj"].shape[1]
    return pl.pallas_call(
        _head_kernel,
        out_shape=jax.ShapeDtypeStruct((B, out_dim), jnp.float32),
        grid=(1,),
        in_specs=[
            _full_spec((B, D)),
            _full_spec((1, D)),
            _full_spec((1, D)),
            _full_spec((D, out_dim)),
        ],
        out_specs=_full_spec((B, out_dim)),
        compiler_params=pltpu.CompilerParams(dimension_semantics=("arbitrary",)),
    )(x_cls, kp["ln_post_w"], kp["ln_post_b"], kp["proj"])


def vit_forward_pallas(x_img, kp, *, patch_size, n_head):
    B = x_img.shape[0]
    patches = _extract_patches(x_img, patch_size)               # (B, P, C*p*p) data movement
    Cpp = patches.shape[2]
    # class-token slot = zero patch row; its embedding lives in pos_cls[0].
    tok_in = jnp.concatenate([jnp.zeros((B, 1, Cpp), patches.dtype), patches], axis=1)

    x = _embed_call(tok_in, kp)                                 # conv1 + cls + pos + ln_pre
    x = _resblock_call(x, kp, n_head)                           # all transformer layers
    pooled = _head_call(x[:, 0, :], kp)                         # ln_post + 'tok' pool + proj
    return pooled


# ------------------------- parameters & kernel layout --------------------------

def init_params(key, *, image_size, patch_size, width, layers, heads, mlp_ratio, output_dim):
    grid = image_size // patch_size
    n_tok = grid * grid + 1
    cpp = 3 * patch_size * patch_size
    mlp_width = int(width * mlp_ratio)
    scale = width ** -0.5
    keys = iter(jax.random.split(key, 4 + 8 * layers))

    p = {
        # conv1.weight stored flattened/transposed: (3*p*p, width)
        "conv_w": (cpp ** -0.5) * jax.random.normal(next(keys), (cpp, width), jnp.float32),
        "cls": scale * jax.random.normal(next(keys), (width,), jnp.float32),
        "pos": scale * jax.random.normal(next(keys), (n_tok, width), jnp.float32),
        "ln_pre_w": jnp.ones((width,), jnp.float32),
        "ln_pre_b": jnp.zeros((width,), jnp.float32),
        "ln_post_w": jnp.ones((width,), jnp.float32),
        "ln_post_b": jnp.zeros((width,), jnp.float32),
        "proj": scale * jax.random.normal(next(keys), (width, output_dim), jnp.float32),
        "blocks": [],
    }
    for _ in range(layers):
        p["blocks"].append({
            "ln1_w": jnp.ones((width,), jnp.float32),
            "ln1_b": jnp.zeros((width,), jnp.float32),
            "ln2_w": jnp.ones((width,), jnp.float32),
            "ln2_b": jnp.zeros((width,), jnp.float32),
            # linear weights stored pre-transposed (in_features, out_features)
            "w_qkv": 0.1 * jax.random.normal(next(keys), (width, 3 * width), jnp.float32),
            "b_qkv": 0.1 * jax.random.normal(next(keys), (3 * width,), jnp.float32),
            "w_out": 0.1 * jax.random.normal(next(keys), (width, width), jnp.float32),
            "b_out": 0.1 * jax.random.normal(next(keys), (width,), jnp.float32),
            "w_fc": 0.1 * jax.random.normal(next(keys), (width, mlp_width), jnp.float32),
            "b_fc": 0.1 * jax.random.normal(next(keys), (mlp_width,), jnp.float32),
            "w_proj": 0.1 * jax.random.normal(next(keys), (mlp_width, width), jnp.float32),
            "b_proj": 0.1 * jax.random.normal(next(keys), (width,), jnp.float32),
        })
    return p


def prepare_kernel_params(params, n_head):
    """Canonical (torch-like, pre-transposed) params -> kernel layout:
       fused bf16 QKV slabs stacked along a leading layer axis,
       1/sqrt(head_dim) folded into the Q third, cls folded into pos[0]."""
    D = params["cls"].shape[0]
    hd = D // n_head
    bf16 = jnp.bfloat16
    scale = 1.0 / math.sqrt(hd)

    kp = {
        "conv_w": params["conv_w"].astype(bf16),
        "pos_cls": params["pos"].at[0].add(params["cls"]),
        "ln_pre_w": params["ln_pre_w"].reshape(1, D),
        "ln_pre_b": params["ln_pre_b"].reshape(1, D),
        "ln_post_w": params["ln_post_w"].reshape(1, D),
        "ln_post_b": params["ln_post_b"].reshape(1, D),
        "proj": params["proj"].astype(bf16),
    }

    acc = {k: [] for k in ("ln1_w", "ln1_b", "ln2_w", "ln2_b",
                           "wqkv", "bqkv", "wo", "bo", "wfc", "bfc", "wpj", "bpj")}
    for bp in params["blocks"]:
        Dm = bp["w_fc"].shape[1]
        w = jnp.concatenate([bp["w_qkv"][:, :D] * scale, bp["w_qkv"][:, D:]], axis=1)
        b = jnp.concatenate([bp["b_qkv"][:D] * scale, bp["b_qkv"][D:]], axis=0)
        acc["ln1_w"].append(bp["ln1_w"].reshape(1, D))
        acc["ln1_b"].append(bp["ln1_b"].reshape(1, D))
        acc["ln2_w"].append(bp["ln2_w"].reshape(1, D))
        acc["ln2_b"].append(bp["ln2_b"].reshape(1, D))
        acc["wqkv"].append(w.astype(bf16))
        acc["bqkv"].append(b.reshape(1, 3 * D))            # biases stay f32
        acc["wo"].append(bp["w_out"].astype(bf16))
        acc["bo"].append(bp["b_out"].reshape(1, D))
        acc["wfc"].append(bp["w_fc"].astype(bf16))
        acc["bfc"].append(bp["b_fc"].reshape(1, Dm))
        acc["wpj"].append(bp["w_proj"].astype(bf16))
        acc["bpj"].append(bp["b_proj"].reshape(1, D))

    for k, v in acc.items():
        kp[k] = jnp.stack(v)                                # (L, ...) stacked weight slabs
    return kp


# ----------------------------- plain-JAX reference -----------------------------

def _ln_ref(x, w, b, eps=1e-5):
    mu = jnp.mean(x, axis=-1, keepdims=True)
    var = jnp.mean((x - mu) ** 2, axis=-1, keepdims=True)
    return (x - mu) / jnp.sqrt(var + eps) * w + b


def vit_forward_reference(x_img, params, *, patch_size, n_head):
    B = x_img.shape[0]
    patches = _extract_patches(x_img, patch_size)
    x = patches @ params["conv_w"]                                   # conv1 (no bias)
    D = x.shape[-1]
    cls = jnp.broadcast_to(params["cls"][None, None, :], (B, 1, D))
    x = jnp.concatenate([cls, x], axis=1) + params["pos"][None]
    x = _ln_ref(x, params["ln_pre_w"], params["ln_pre_b"])           # ln_pre

    N = x.shape[1]
    hd = D // n_head
    for bp in params["blocks"]:
        h = _ln_ref(x, bp["ln1_w"], bp["ln1_b"])
        qkv = h @ bp["w_qkv"] + bp["b_qkv"]
        q, k, v = jnp.split(qkv, 3, axis=-1)

        def split_heads(t):
            return t.reshape(B, N, n_head, hd).transpose(0, 2, 1, 3)

        qh, kh, vh = split_heads(q), split_heads(k), split_heads(v)
        s = jnp.einsum("bhqe,bhke->bhqk", qh, kh) / math.sqrt(hd)
        p = jax.nn.softmax(s, axis=-1)
        o = jnp.einsum("bhqk,bhke->bhqe", p, vh).transpose(0, 2, 1, 3).reshape(B, N, D)
        x = x + (o @ bp["w_out"] + bp["b_out"])
        h2 = _ln_ref(x, bp["ln2_w"], bp["ln2_b"])
        m = jax.nn.gelu(h2 @ bp["w_fc"] + bp["b_fc"], approximate=False)
        x = x + (m @ bp["w_proj"] + bp["b_proj"])

    x = _ln_ref(x, params["ln_post_w"], params["ln_post_b"])         # ln_post
    return x[:, 0] @ params["proj"]                                  # 'tok' pool + proj


# ----------------------------------- main ---------------------------------------

if __name__ == "__main__":
    B = 2
    image_size, patch_size = 16, 4          # grid 4x4 -> 16 patches + 1 cls = 17 tokens
    width, layers, heads = 32, 2, 4
    mlp_ratio = 4.0
    output_dim = 16

    key = jax.random.PRNGKey(0)
    k_img, k_par = jax.random.split(key)
    x_img = jax.random.normal(k_img, (B, 3, image_size, image_size), jnp.float32)

    params = init_params(k_par, image_size=image_size, patch_size=patch_size,
                         width=width, layers=layers, heads=heads,
                         mlp_ratio=mlp_ratio, output_dim=output_dim)
    kparams = prepare_kernel_params(params, heads)

    pooled = vit_forward_pallas(x_img, kparams, patch_size=patch_size, n_head=heads)
    pooled = jax.block_until_ready(pooled)

    ref = vit_forward_reference(x_img, params, patch_size=patch_size, n_head=heads)
    # Tolerance reflects bf16 MXU operands, tanh GELU and approx reciprocal
    # (f32 accumulation / layernorm / softmax statistics in-kernel).
    np.testing.assert_allclose(np.asarray(pooled), np.asarray(ref), rtol=3e-2, atol=3e-2)

    print("KERNEL_OK")
</pallas_src>

<mosaic_0001>
module attributes {stable_mosaic.version = 11 : i64} {
  func.func @_embed_kernel(%arg0: i32, %arg1: memref<1x17x48xf32, #tpu.memory_space<vmem>>, %arg2: memref<48x32xbf16, #tpu.memory_space<vmem>>, %arg3: memref<17x32xf32, #tpu.memory_space<vmem>>, %arg4: memref<1x32xf32, #tpu.memory_space<vmem>>, %arg5: memref<1x32xf32, #tpu.memory_space<vmem>>, %arg6: memref<1x17x32xf32, #tpu.memory_space<vmem>>) attributes {dimension_semantics = [#tpu.dimension_semantics<parallel>], iteration_bounds = array<i64: 2>, scalar_prefetch = 0 : i64, scratch_operands = 0 : i64, tpu.core_type = #tpu.core_type<tc>, window_params = [{transform_indices = @transform_0, window_bounds = array<i64: 1, 17, 48>}, {pipeline_mode = #tpu.pipeline_mode<synchronous>, transform_indices = @transform_1, window_bounds = array<i64: 48, 32>}, {pipeline_mode = #tpu.pipeline_mode<synchronous>, transform_indices = @transform_2, window_bounds = array<i64: 17, 32>}, {pipeline_mode = #tpu.pipeline_mode<synchronous>, transform_indices = @transform_3, window_bounds = array<i64: 1, 32>}, {pipeline_mode = #tpu.pipeline_mode<synchronous>, transform_indices = @transform_4, window_bounds = array<i64: 1, 32>}, {transform_indices = @transform_5, window_bounds = array<i64: 1, 17, 32>}]} {
    %c0 = arith.constant 0 : index
    %c0_0 = arith.constant 0 : index
    %c0_1 = arith.constant 0 : index
    %0 = vector.load %arg1[%c0, %c0_0, %c0_1] : memref<1x17x48xf32, #tpu.memory_space<vmem>>, vector<1x17x48xf32>
    %1 = vector.shape_cast %0 : vector<1x17x48xf32> to vector<17x48xf32>
    %2 = arith.truncf %1 : vector<17x48xf32> to vector<17x48xbf16>
    %c0_2 = arith.constant 0 : index
    %c0_3 = arith.constant 0 : index
    %3 = vector.load %arg2[%c0_2, %c0_3] : memref<48x32xbf16, #tpu.memory_space<vmem>>, vector<48x32xbf16>
    %cst = arith.constant dense<0.000000e+00> : vector<17x32xf32>
    %4 = tpu.matmul %2, %3, %cst {dimension_numbers = #tpu.dot_dimension_numbers<[1], [0], [0], [1], [0, 0, 1, 1], [], []>} : vector<17x48xbf16>, vector<48x32xbf16>, vector<17x32xf32> -> vector<17x32xf32>
    %c0_4 = arith.constant 0 : index
    %c0_5 = arith.constant 0 : index
    %5 = vector.load %arg3[%c0_4, %c0_5] : memref<17x32xf32, #tpu.memory_space<vmem>>, vector<17x32xf32>
    %6 = arith.addf %4, %5 : vector<17x32xf32>
    %c0_6 = arith.constant 0 : index
    %c0_7 = arith.constant 0 : index
    %7 = vector.load %arg4[%c0_6, %c0_7] : memref<1x32xf32, #tpu.memory_space<vmem>>, vector<1x32xf32>
    %c0_8 = arith.constant 0 : index
    %c0_9 = arith.constant 0 : index
    %8 = vector.load %arg5[%c0_8, %c0_9] : memref<1x32xf32, #tpu.memory_space<vmem>>, vector<1x32xf32>
    %cst_10 = arith.constant dense<0.000000e+00> : vector<17xf32>
    %9 = vector.multi_reduction <add>, %6, %cst_10 [1] : vector<17x32xf32> to vector<17xf32>
    %10 = vector.shape_cast %9 : vector<17xf32> to vector<17x1xf32>
    %cst_11 = arith.constant 3.200000e+01 : f32
    %11 = vector.broadcast %cst_11 : f32 to vector<17x1xf32>
    %12 = arith.divf %10, %11 : vector<17x1xf32>
    %13 = vector.broadcast %12 : vector<17x1xf32> to vector<17x32xf32>
    %14 = arith.subf %6, %13 : vector<17x32xf32>
    %15 = arith.mulf %14, %14 : vector<17x32xf32>
    %cst_12 = arith.constant dense<0.000000e+00> : vector<17xf32>
    %16 = vector.multi_reduction <add>, %15, %cst_12 [1] : vector<17x32xf32> to vector<17xf32>
    %17 = vector.shape_cast %16 : vector<17xf32> to vector<17x1xf32>
    %cst_13 = arith.constant 3.200000e+01 : f32
    %18 = vector.broadcast %cst_13 : f32 to vector<17x1xf32>
    %19 = arith.divf %17, %18 : vector<17x1xf32>
    %cst_14 = arith.constant 9.99999974E-6 : f32
    %20 = vector.broadcast %cst_14 : f32 to vector<17x1xf32>
    %21 = arith.addf %19, %20 : vector<17x1xf32>
    %22 = math.rsqrt %21 : vector<17x1xf32>
    %23 = vector.broadcast %22 : vector<17x1xf32> to vector<17x32xf32>
    %24 = arith.mulf %14, %23 : vector<17x32xf32>
    %25 = vector.broadcast %7 : vector<1x32xf32> to vector<17x32xf32>
    %26 = arith.mulf %24, %25 : vector<17x32xf32>
    %27 = vector.broadcast %8 : vector<1x32xf32> to vector<17x32xf32>
    %28 = arith.addf %26, %27 : vector<17x32xf32>
    %c0_15 = arith.constant 0 : index
    %c0_16 = arith.constant 0 : index
    %c0_17 = arith.constant 0 : index
    %29 = vector.load %arg6[%c0_15, %c0_16, %c0_17] : memref<1x17x32xf32, #tpu.memory_space<vmem>>, vector<1x17x32xf32>
    %30 = vector.shape_cast %29 : vector<1x17x32xf32> to vector<17x32xf32>
    %31 = vector.shape_cast %28 : vector<17x32xf32> to vector<1x17x32xf32>
    tpu.vector_store %arg6[%c0_15, %c0_16, %c0_17], %31 {strides = array<i32>} : memref<1x17x32xf32, #tpu.memory_space<vmem>>, vector<1x17x32xf32>,
    return
  }
  func.func @transform_0(%arg0: i32) -> (i32, i32, i32) {
    %c0_i32 = arith.constant 0 : i32
    %c0_i32_0 = arith.constant 0 : i32
    %c0_i32_1 = arith.constant 0 : i32
    return %arg0, %c0_i32, %c0_i32_0 : i32, i32, i32
  }
  func.func @transform_1(%arg0: i32) -> (i32, i32) {
    %c0_i32 = arith.constant 0 : i32
    %c0_i32_0 = arith.constant 0 : i32
    %c0_i32_1 = arith.constant 0 : i32
    return %c0_i32, %c0_i32_0 : i32, i32
  }
  func.func @transform_2(%arg0: i32) -> (i32, i32) {
    %c0_i32 = arith.constant 0 : i32
    %c0_i32_0 = arith.constant 0 : i32
    %c0_i32_1 = arith.constant 0 : i32
    return %c0_i32, %c0_i32_0 : i32, i32
  }
  func.func @transform_3(%arg0: i32) -> (i32, i32) {
    %c0_i32 = arith.constant 0 : i32
    %c0_i32_0 = arith.constant 0 : i32
    %c0_i32_1 = arith.constant 0 : i32
    return %c0_i32, %c0_i32_0 : i32, i32
  }
  func.func @transform_4(%arg0: i32) -> (i32, i32) {
    %c0_i32 = arith.constant 0 : i32
    %c0_i32_0 = arith.constant 0 : i32
    %c0_i32_1 = arith.constant 0 : i32
    return %c0_i32, %c0_i32_0 : i32, i32
  }
  func.func @transform_5(%arg0: i32) -> (i32, i32, i32) {
    %c0_i32 = arith.constant 0 : i32
    %c0_i32_0 = arith.constant 0 : i32
    %c0_i32_1 = arith.constant 0 : i32
    return %arg0, %c0_i32, %c0_i32_0 : i32, i32, i32
  }
}

</mosaic_0001>

<bundles_post_ra>
// kernel: tpu_custom_call.1
= control target key start
LH: loop header
LB: loop body
LE: loop exit
PB: predicated region body
PF: predicated region fallthrough
CT: control target
= control target key end

     0   :  { %s520_s18 = smov 0   ;;  %s577_s0 = inlined_call_operand.vmem [shape: f32[2,17,48], index: 0, kind: input, shape index: {}]   ;;  %s578_s1 = inlined_call_operand.vmem [shape: bf16[48,32], index: 1, kind: input, shape index: {}]   ;;  %s579_s2 = inlined_call_operand.vmem [shape: f32[17,32], index: 2, kind: input, shape index: {}]   ;;  %s580_s3 = inlined_call_operand.vmem [shape: f32[1,32], index: 3, kind: input, shape index: {}]   ;;  %s581_s4 = inlined_call_operand.vmem [shape: f32[1,32], index: 4, kind: input, shape index: {}]   ;;  %s582_s5 = inlined_call_operand.vmem [shape: f32[2,17,32], index: 5, kind: output, shape index: {}]  }
   0x1 LB: > { %s433_s19 = sadd.s32 4294967295, %s488_s18   ;;  %p437_p0 = scmp.ge.s32.totalorder %s488_s18, 1  ;;  %s488_s18 = sphi %s520_s18, %s15_s18  }
   0x2   : > { %p187_p1 = scmp.lt.s32.totalorder %s488_s18, 3 }
   0x4   : > { %p188_p2 = pnand %p437_p0, %p187_p1 }
   0x5   : > { %v473_v0 = vld [vmem:[%s578_s1] sm:$0xff] (!%p188_p2)   ;;  %p215_p3 = scmp.lt.s32.totalorder (!%p188_p2), %s433_s19, 1  ;;  %v474_v1 = vld [vmem:[%s578_s1 + $0x8] sm:$0xff] (!%p188_p2)   ;;  %v475_v2 = vld [vmem:[%s578_s1 + $0x10] sm:$0xff] (!%p188_p2)   ;;  %vm258_vm0 = vcmask (!%p188_p2), 392192   ;;  %vm322_vm1 = vcmask (!%p188_p2), 253952  }
   0x6   : > { %191 = sbr.rel (%p188_p2) target bundleno = 555 (0x22b), region = 40  ;;  %454 = vmatprep.subr.bf16.mxu0 (!%p188_p2), %v473_v0  ;;  %v239_v8 = vld [vmem:[%s579_s2 + $0x10] sm:$0x1] (!%p188_p2)  ;;  %v237_v9 = vld [vmem:[%s579_s2] sm:$0xff] (!%p188_p2)  ;;  %v238_v13 = vld [vmem:[%s579_s2 + $0x8] sm:$0xff] (!%p188_p2)  ;;  %vm315_vm2 = vcmask (!%p188_p2), 261120  }
   0x7   : > { %455 = vmatpush3.bf16.msra.mxu0 (!%p188_p2), %v473_v0  ;;  %v445_v46 = vld [vmem:[%s580_s3] ss:$0 sm:$0xff] (!%p188_p2) }
   0x8   : > { %456 = vmatprep.subr.bf16.mxu0 (!%p188_p2), %v474_v1  ;;  %v446_v48 = vld [vmem:[%s581_s4] ss:$0 sm:$0xff] (!%p188_p2) }
   0xb   : > { %457 = vmatpush3.bf16.msra.mxu0 (!%p188_p2), %v474_v1 }
   0xc   : > { %458 = vmatprep.subr.bf16.mxu0 (!%p188_p2), %v475_v2 }
   0xd   : > { %s584_s19 = smov (!%p215_p3, %s433_s19), 1 }
   0xe   : > { %s464_s26 = smul.u32 24, %s584_s19 }
   0xf   : > { %459 = vmatpush3.bf16.msra.mxu0 %v475_v2 }
  0x10   : > { %s219_s29 = scalar_lea.vmem %s577_s0, %s464_s26  ;;  %s224_s17 = scalar_lea.vmem %s582_s5, %s464_s26 }
  0x11   : > { %v226_v3 = vld [vmem:[%s219_s29] sm:$0xff]  ;;  %v227_v4 = vld [vmem:[%s219_s29 + $0x8] sm:$0xff]  ;;  %v228_v5 = vld [vmem:[%s219_s29 + $0x10] sm:$0x1] }
  0x12   : > { %v229_v6 = vpack.c.bf16 %v227_v4, %v226_v3  ;;  %v230_v7 = vpack.c.bf16 %v228_v5, %v228_v5 }
  0x14   : > { %460 = vmatprep.mubr.msk.bf16.mxu0 %vm258_vm0, %v229_v6 }
  0x15   : > { %461 = vmatmul.mubr.msk.bf16.vlgmr.msra.gmra.mrb[0].mxu0 %vm258_vm0, %v230_v7 }
  0xe8   : > { %v462_v10 = vpop.f32.mrb[0].mxu0 }
  0xe9   : > { %v308_v11 = vadd.f32 %v462_v10, %v239_v8  ;;  %v299_v12 = vpop.f32.mrb[1].mxu0 }
  0xea   : > { %v300_v14 = vadd.f32 %v299_v12, %v237_v9  ;;  %v463_v15 = vpop.f32.mrb[2].mxu0 }
  0xeb   : > { %v302_v16 = vpop.f32.mrb[3].mxu0  ;;  %v323_v17 = vsel %vm322_vm1, %v308_v11, 0.0 }
  0xec   : > { %v303_v18 = vadd.f32 %v302_v16, %v238_v13  ;;  %324 = vadd.xlane.f32.xlu1 %v323_v17  ;;  %v316_v19 = vsel %vm315_vm2, %v300_v14, 0.0 }
  0xed   : > { %317 = vadd.xlane.f32.xlu0 %v316_v19 }
  0xee   : > { %v319_v20 = vsel %vm315_vm2, %v303_v18, 0.0 }
  0xf1   : > { %320 = vadd.xlane.f32.xlu0 %v319_v20 }
 0x179   : > { %v325_v21 = vpop.xlane.xlu1 %324 }
 0x17a   : > { %v329_v22 = vmul.f32 0.03125, %v325_v21  ;;  %v318_v23 = vpop.xlane.xlu0 %317 }
 0x17b   : > { %v327_v24 = vmul.f32 0.03125, %v318_v23 }
 0x17c   : > { %v332_v25 = vsub.f32 %v308_v11, %v329_v22 }
 0x17d   : > { %v330_v26 = vsub.f32 %v300_v14, %v327_v24 }
 0x17e   : > { %v321_v27 = vpop.xlane.xlu0 %320  ;;  %v335_v32 = vmul.f32 %v332_v25, %v332_v25 }
 0x17f   : > { %v328_v28 = vmul.f32 0.03125, %v321_v27  ;;  %v333_v29 = vmul.f32 %v330_v26, %v330_v26 }
 0x180   : > { %v342_v34 = vsel %vm322_vm1, %v335_v32, 0.0 }
 0x181   : > { %v331_v30 = vsub.f32 %v303_v18, %v328_v28  ;;  %v336_v31 = vsel %vm315_vm2, %v333_v29, 0.0 }
 0x182   : > { %337 = vadd.xlane.f32.xlu1 %v336_v31 }
 0x183   : > { %v334_v33 = vmul.f32 %v331_v30, %v331_v30 }
 0x185   : > { %v339_v35 = vsel %vm315_vm2, %v334_v33, 0.0 }
 0x186   : > { %343 = vadd.xlane.f32.xlu1 %v342_v34  ;;  %340 = vadd.xlane.f32.xlu0 %v339_v35 }
 0x20f   : > { %v338_v36 = vpop.xlane.xlu1 %337 }
 0x210   : > { %v345_v37 = vmul.f32 0.03125, %v338_v36 }
 0x212   : > { %v348_v38 = vadd.f32 1e-05, %v345_v37 }
 0x213   : > { %v344_v39 = vpop.xlane.xlu1 %343  ;;  %v341_v40 = vpop.xlane.xlu0 %340 }
 0x214   : > { %476 = vrsqrt.f32 %v348_v38  ;;  %v347_v41 = vmul.f32 0.03125, %v344_v39  ;;  %v346_v42 = vmul.f32 0.03125, %v341_v40 }
 0x216   : > { %v350_v43 = vadd.f32 1e-05, %v347_v41  ;;  %v349_v44 = vadd.f32 1e-05, %v346_v42 }
 0x218   : > { %478 = vrsqrt.f32 %v350_v43 }
 0x219   : > { %480 = vrsqrt.f32 %v349_v44 }
 0x21e   : > { %v477_v45 = vpop.eup %476 }
 0x21f   : > { %v354_v47 = vmul.f32 %v477_v45, %v330_v26 }
 0x221   : > { %v363_v49 = vmul.f32 %v445_v46, %v354_v47 }
 0x222   : > { %v479_v50 = vpop.eup %478 }
 0x223   : > { %v481_v51 = vpop.eup %480  ;;  %v372_v52 = vadd.f32 %v446_v48, %v363_v49  ;;  %v356_v53 = vmul.f32 %v479_v50, %v332_v25 }
 0x224   : > { %v355_v54 = vmul.f32 %v481_v51, %v331_v30 }
 0x225   : > { %375 = vst.msk [vmem:[%s224_s17] sm:$0xff] %vm315_vm2, %v372_v52  ;;  %v365_v55 = vmul.f32 %v445_v46, %v356_v53 }
 0x226   : > { %v364_v56 = vmul.f32 %v445_v46, %v355_v54 }
 0x227   : > { %v374_v57 = vadd.f32 %v446_v48, %v365_v55 }
 0x228   : > { %v373_v58 = vadd.f32 %v446_v48, %v364_v56 }
 0x229   : > { %377 = vst.msk [vmem:[%s224_s17 + $0x10] sm:$0x1] %vm322_vm1, %v374_v57 }
 0x22a   : > { %376 = vst.msk [vmem:[%s224_s17 + $0x8] sm:$0xff] %vm315_vm2, %v373_v58 }
 0x22b PF: > { %s15_s18 = sadd.s32 1, %s488_s18  }
 0x22c   : > { %p12_p4 = scmp.ge.s32.totalorder %s15_s18, 4  }
 0x22e   :  { %14 = sbr.rel (!%p12_p4) target bundleno = 1 (0x1), region = 70 }

</bundles_post_ra>
